<compile_context>
chip_gen: v7x
topology: tpu7x:2x2x1
jax: 0.10.0
libtpu: 0.0.40
codegen_flags: <defaults>
</compile_context>

<pallas_src>
import jax
import jax.numpy as jnp
import numpy as np
from jax.experimental import pallas as pl
from jax.experimental.pallas import tpu as pltpu

_LANE = 128
_MAX_BLOCK_ROWS = 1024  # (1024, 128) f32 = 512 KiB/block; in+out double-buffered ~2 MiB


def _round_up(n: int, m: int) -> int:
    return ((n + m - 1) // m) * m


def _unorm_gps_kernel(x_ref, o_ref):
    # x_ref block is a lane-dense (block_rows, 128) slab of interleaved
    # [lat, lon, lat, lon, ...] values (flat row-major order of the (B, 2)
    # input; 128 is even so lane parity == lat/lon parity).
    x = x_ref[...].astype(jnp.float32)
    x = jnp.clip(x, -1.0, 1.0)
    # Compile-time constant scale: even lanes (lat) -> pi/2, odd lanes (lon) -> pi.
    lane_idx = jax.lax.broadcasted_iota(jnp.int32, x.shape, dimension=1)
    scale = jnp.where((lane_idx & 1) == 0,
                      jnp.float32(np.pi * 0.5),
                      jnp.float32(np.pi))
    o_ref[...] = (x * scale).astype(o_ref.dtype)


def unorm_gps(x: jax.Array) -> jax.Array:
    """Unnormalize (lat, lon) from [-1, 1] to radians, via a Pallas kernel."""
    assert x.ndim == 2 and x.shape[-1] == 2, "expected (B, 2) input"
    b = x.shape[0]
    total = b * 2

    # Lane-dense slab: flatten, pad to a whole number of (block_rows, 128) tiles.
    rows = -(-total // _LANE)                         # ceil(total / 128)
    if rows <= _MAX_BLOCK_ROWS:
        block_rows = _round_up(rows, 8)               # single block, (8,128)-aligned
    else:
        block_rows = _MAX_BLOCK_ROWS
    padded_rows = _round_up(rows, block_rows)
    padded_total = padded_rows * _LANE

    flat = x.reshape(-1)
    if padded_total != total:
        flat = jnp.pad(flat, (0, padded_total - total))   # pad values discarded below
    x2d = flat.reshape(padded_rows, _LANE)

    out2d = pl.pallas_call(
        _unorm_gps_kernel,
        out_shape=jax.ShapeDtypeStruct((padded_rows, _LANE), x.dtype),
        grid=(padded_rows // block_rows,),
        in_specs=[pl.BlockSpec((block_rows, _LANE), lambda i: (i, 0))],
        out_specs=pl.BlockSpec((block_rows, _LANE), lambda i: (i, 0)),
        compiler_params=pltpu.CompilerParams(
            dimension_semantics=("parallel",)),
    )(x2d)

    return out2d.reshape(-1)[:total].reshape(b, 2)


def _reference(x: jnp.ndarray) -> jnp.ndarray:
    scale = jnp.array([[np.pi * 0.5, np.pi]], dtype=jnp.float32)
    return (jnp.clip(x.astype(jnp.float32), -1.0, 1.0) * scale).astype(x.dtype)


if __name__ == "__main__":
    key = jax.random.PRNGKey(0)
    # Small batch of normalized GPS coords; values outside [-1, 1] exercise the clamp.
    x = jax.random.uniform(key, (8, 2), dtype=jnp.float32, minval=-1.5, maxval=1.5)

    out = unorm_gps(x)
    out = jax.block_until_ready(out)

    ref = _reference(x)
    np.testing.assert_allclose(np.asarray(out), np.asarray(ref), rtol=1e-6, atol=1e-6)
    print("KERNEL_OK")
</pallas_src>

<mosaic_0001>
module attributes {stable_mosaic.version = 11 : i64} {
  func.func @_unorm_gps_kernel(%arg0: i32, %arg1: memref<8x128xf32, #tpu.memory_space<vmem>>, %arg2: memref<8x128xf32, #tpu.memory_space<vmem>>) attributes {dimension_semantics = [#tpu.dimension_semantics<parallel>], iteration_bounds = array<i64: 1>, scalar_prefetch = 0 : i64, scratch_operands = 0 : i64, tpu.core_type = #tpu.core_type<tc>, window_params = [{transform_indices = @transform_0, window_bounds = array<i64: 8, 128>}, {transform_indices = @transform_1, window_bounds = array<i64: 8, 128>}]} {
    %c0 = arith.constant 0 : index
    %c0_0 = arith.constant 0 : index
    %0 = vector.load %arg1[%c0, %c0_0] : memref<8x128xf32, #tpu.memory_space<vmem>>, vector<8x128xf32>
    %cst = arith.constant -1.000000e+00 : f32
    %cst_1 = arith.constant 1.000000e+00 : f32
    %1 = vector.broadcast %cst : f32 to vector<8x128xf32>
    %2 = arith.maximumf %1, %0 : vector<8x128xf32>
    %3 = vector.broadcast %cst_1 : f32 to vector<8x128xf32>
    %4 = arith.minimumf %3, %2 : vector<8x128xf32>
    %5 = tpu.iota {dimensions = array<i32: 1>} : vector<8x128xi32>
    %c1_i32 = arith.constant 1 : i32
    %6 = vector.broadcast %c1_i32 : i32 to vector<8x128xi32>
    %7 = arith.andi %5, %6 : vector<8x128xi32>
    %c0_i32 = arith.constant 0 : i32
    %8 = vector.broadcast %c0_i32 : i32 to vector<8x128xi32>
    %9 = arith.cmpi eq, %7, %8 : vector<8x128xi32>
    %cst_2 = arith.constant 1.57079637 : f32
    %cst_3 = arith.constant 3.14159274 : f32
    %10 = vector.broadcast %cst_2 : f32 to vector<8x128xf32>
    %11 = vector.broadcast %cst_3 : f32 to vector<8x128xf32>
    %12 = arith.select %9, %10, %11 : vector<8x128xi1>, vector<8x128xf32>
    %13 = arith.mulf %4, %12 : vector<8x128xf32>
    %c0_4 = arith.constant 0 : index
    %c0_5 = arith.constant 0 : index
    %14 = vector.load %arg2[%c0_4, %c0_5] : memref<8x128xf32, #tpu.memory_space<vmem>>, vector<8x128xf32>
    tpu.vector_store %arg2[%c0_4, %c0_5], %13 {strides = array<i32>} : memref<8x128xf32, #tpu.memory_space<vmem>>, vector<8x128xf32>,
    return
  }
  func.func @transform_0(%arg0: i32) -> (i32, i32) {
    %c0_i32 = arith.constant 0 : i32
    %c0_i32_0 = arith.constant 0 : i32
    return %arg0, %c0_i32 : i32, i32
  }
  func.func @transform_1(%arg0: i32) -> (i32, i32) {
    %c0_i32 = arith.constant 0 : i32
    %c0_i32_0 = arith.constant 0 : i32
    return %arg0, %c0_i32 : i32, i32
  }
}

</mosaic_0001>

<bundles_post_ra>
// kernel: tpu_custom_call.1
= control target key start
LH: loop header
LB: loop body
LE: loop exit
PB: predicated region body
PF: predicated region fallthrough
CT: control target
= control target key end

     0   :  { %6 = vsyncpa [#allocation3], 0  ;;  %s135_s0 = inlined_call_operand.hbm [shape: f32[8,128], index: 0, kind: input, shape index: {}]   ;;  %s136_s1 = inlined_call_operand.hbm [shape: f32[8,128], index: 1, kind: output, shape index: {}]  }
   0x1   :  { %7 = vsyncpa [#allocation4], 0  ;;  %s98_s6 = smov [#allocation2]   ;;  %s50_s10 = scalar_lea.hbm %s135_s0, 128 }
   0x2   :  { %s14_s7 = sshll.u32 %s98_s6, 4  ;;  %p51_p0 = scmp.ne.s32.totalorder %s135_s0, %s50_s10  ;;  %s15_s7 = int_to_ptr.vmem [resolvable:$true] %s14_s7 }
   0x3   :  { %p54_p1 = scmp.lt.u32.totalorder %s50_s10, %s135_s0 }
   0x5   :  { %p56_p2 = pnand %p54_p1, %p51_p0 }
   0x7   :  { %59 = shalt.err (!%p56_p2)
}
   0x8   :  { %s60_s15 = scalar_lea.vmem %s15_s7, 128  ;;  %p65_p4 = scmp.lt.s32.totalorder %s15_s7, %s15_s7 }
   0x9   :  { %p61_p3 = scmp.ne.s32.totalorder %s15_s7, %s60_s15  ;;  %p66_p5 = scmp.lt.s32.totalorder %s60_s15, %s60_s15 }
   0xb   :  { %p67_p6 = por %p66_p5, %p65_p4 }
   0xd   :  { %p68_p7 = pnand %p67_p6, %p61_p3 }
   0xf   :  { %71 = shalt.err (!%p68_p7)
}
  0x10   :  { %17 = dma.hbm_to_vmem [thread:$0]  %s135_s0, 128, %s15_s7, [#allocation3]  }
  0x11   :  { %94 = dma.done.wait [#allocation3], 128  }
  0x12   :  { %95 = vsyncadd [#allocation3], 4294967168  ;;  %v24_v0 = vlaneseq  ;;  %v21_v3 = vld [vmem:[#allocation2] sm:$0xff]  ;;  %v99_v4 = vmov 3.1415927   ;;  %s100_s18 = smov [#allocation5]  }
  0x13   :  { %s37_s19 = sshll.u32 %s100_s18, 4  ;;  %v46_v6 = vclamps-f32 %v21_v3, 1.0  ;;  %s38_s19 = int_to_ptr.vmem [resolvable:$true] %s37_s19 }
  0x14   :  { %v25_v1 = vand.u32 127, %v24_v0  ;;  %s72_s20 = scalar_lea.vmem %s38_s19, 128  ;;  %p77_p9 = scmp.lt.s32.totalorder %s38_s19, %s38_s19 }
  0x15   :  { %p73_p8 = scmp.ne.s32.totalorder %s38_s19, %s72_s20  ;;  %p78_p10 = scmp.lt.s32.totalorder %s72_s20, %s72_s20 }
  0x16   :  { %v26_v2 = vand.u32 1, %v25_v1 }
  0x17   :  { %p79_p11 = por %p78_p10, %p77_p9 }
  0x18   :  { %vm27_vm0 = vcmp.eq.s32.totalorder %v26_v2, 0 }
  0x19   :  { %v28_v5 = vsel %vm27_vm0, 1.5707964, %v99_v4  ;;  %p80_p12 = pnand %p79_p11, %p73_p8 }
  0x1a   :  { %v29_v7 = vmul.f32 %v46_v6, %v28_v5 }
  0x1c   :  { %30 = vst [vmem:[#allocation5] sm:$0xff] %v29_v7 }
  0x1d   :  { %83 = shalt.err (!%p80_p12)
}
  0x1e   :  { %s84_s22 = scalar_lea.hbm %s136_s1, 128 }
  0x1f   :  { %p85_p13 = scmp.ne.s32.totalorder %s136_s1, %s84_s22  ;;  %p88_p0 = scmp.lt.u32.totalorder %s84_s22, %s136_s1 }
  0x21   :  { %p90_p1 = pnand %p88_p0, %p85_p13 }
  0x23   :  { %93 = shalt.err (!%p90_p1)
}
  0x24   :  { %40 = dma.vmem_to_hbm [thread:$0]  %s38_s19, 128, %s136_s1, [#allocation4]  }
  0x25   :  { %96 = dma.done.wait [#allocation4], 128  }
  0x26   :  { %97 = vsyncadd [#allocation4], 4294967168 }
  0x27   :  { %44 = vsyncpa [#allocation3], 1 }
  0x28   :  { %45 = vsyncpa [#allocation4], 1 }

</bundles_post_ra>
